<compile_context>
chip_gen: v5e
topology: v5e:2x2
jax: 0.10.0
libtpu: 0.0.40
codegen_flags: <defaults>
</compile_context>

<pallas_src>
import functools

import jax
import jax.numpy as jnp
from jax.experimental import pallas as pl
from jax.experimental.pallas import tpu as pltpu


LANE = 128      # lane width (fast axis)
SUBLANE = 8     # f32 sublane tile


def _round_up(n, m):
    return ((n + m - 1) // m) * m


# --------------------------------------------------------------------------- #
# Kernel: one tile_m-row slab of the 3-layer MLP. h1/h2 never leave VMEM/vregs.
# --------------------------------------------------------------------------- #
def dqn_kernel(x_ref, w1_ref, b1_ref, w2_ref, b2_ref, w3_ref, b3_ref, out_ref):
    # In-kernel cast of x to the weight dtype (no extra HBM pass in the wrapper;
    # no-op when weights are f32). Accumulation is always f32 on the MXU.
    x = x_ref[...].astype(w1_ref.dtype)
    h1 = jnp.dot(x, w1_ref[...], preferred_element_type=jnp.float32)
    h1 = jnp.maximum(h1 + b1_ref[...], 0.0)
    h2 = jnp.dot(h1.astype(w2_ref.dtype), w2_ref[...],
                 preferred_element_type=jnp.float32)
    h2 = jnp.maximum(h2 + b2_ref[...], 0.0)
    out = jnp.dot(h2.astype(w3_ref.dtype), w3_ref[...],
                  preferred_element_type=jnp.float32)
    out_ref[...] = (out + b3_ref[...]).astype(out_ref.dtype)


# --------------------------------------------------------------------------- #
# One-time parameter prep (hoisted out of the per-call forward).
# --------------------------------------------------------------------------- #
def prepare_params(params, *, param_dtype=jnp.float32, lane_dense_out=True):
    """Convert ((w1,b1),(w2,b2),(w3,b3)) -> kernel-ready arrays, ONCE.

    param_dtype=jnp.bfloat16 halves weight DMA bytes and runs the MXU at bf16
    rate on all of v5e/v6e/v7x (accumulation stays f32 in-kernel). Biases are
    kept f32 since the bias add happens after the f32 accumulate.

    lane_dense_out=True  -> fc3 padded to 128 output columns (unmasked stores).
    lane_dense_out=False -> fc3 kept at action_size columns (32x fewer HBM
                            write bytes at f32; masked stores).
    """
    (w1, b1), (w2, b2), (w3, b3) = params
    hidden, action_size = w3.shape

    def row(b):
        return jnp.asarray(b, jnp.float32).reshape(1, -1)

    if lane_dense_out:
        out_cols = max(LANE, _round_up(action_size, LANE))
        w3p = jnp.zeros((hidden, out_cols), w3.dtype).at[:, :action_size].set(w3)
        b3p = jnp.zeros((1, out_cols), jnp.float32).at[:, :action_size].set(row(b3))
    else:
        w3p, b3p = w3, row(b3)

    return (w1.astype(param_dtype), row(b1),
            w2.astype(param_dtype), row(b2),
            w3p.astype(param_dtype), b3p)


# --------------------------------------------------------------------------- #
# Forward pass.
# --------------------------------------------------------------------------- #
@functools.partial(jax.jit, static_argnames=("action_size", "tile_m", "out_dtype"))
def dqn_forward(x, prepped, *, action_size, tile_m=1024, out_dtype=jnp.float32):
    """Batched DQN forward: x (batch, state_size) f32 -> (batch, action_size).

    prepped: output of prepare_params(...). tile_m=1024 (up to 2048) keeps the
    grid-step overhead small; for batches >= 512 the tile is capped so there
    are >= 2 grid steps (v7x megacore). out_dtype=jnp.bfloat16 halves the HBM
    writeback bytes (Q-values can be upcast by the caller).
    """
    w1, b1, w2, b2, w3, b3 = prepped
    batch, state_size = x.shape
    hidden = w1.shape[1]
    out_cols = w3.shape[1]

    # --- batch tiling --------------------------------------------------------
    # Only align rows to the sublane multiple (8 for f32, 16 for bf16 output);
    # replay-buffer batches are normally already aligned -> no copy of x.
    sub = SUBLANE if jnp.dtype(out_dtype).itemsize >= 4 else 2 * SUBLANE
    rows = _round_up(batch, sub)
    if rows != batch:
        x = jnp.pad(x, ((0, rows - batch), (0, 0)))

    tm = max(sub, min(tile_m, rows))
    tm = _round_up(tm, sub)
    # v7x megacore: ensure >= 2 grid steps for mid/large batches so the
    # "parallel" axis shards across both TensorCores (no-op on v5e/v6e).
    if rows >= 2 * 256 and tm > pl.cdiv(rows, 2):
        tm = _round_up(pl.cdiv(rows, 2), 256)
    grid_m = pl.cdiv(rows, tm)  # ragged final block handled by Pallas

    def resident(arr):
        # Same block every grid step -> DMA'd once, stays resident in VMEM.
        return pl.BlockSpec(arr.shape, lambda i: (0, 0))

    # --- scoped VMEM: only raise the limit if a huge tile actually needs it --
    weight_bytes = sum(int(a.size) * a.dtype.itemsize
                       for a in (w1, b1, w2, b2, w3, b3))
    est = (2 * tm * state_size * x.dtype.itemsize          # x double buffer
           + 2 * tm * out_cols * jnp.dtype(out_dtype).itemsize  # out double buffer
           + 2 * weight_bytes                               # resident weights
           + 4 * tm * hidden * 4)                           # h1/h2 f32 live values
    vmem_limit = None
    if est > 12 * (1 << 20):
        vmem_limit = int(min(max(2 * est, 16 * (1 << 20)), 48 * (1 << 20)))

    out = pl.pallas_call(
        dqn_kernel,
        out_shape=jax.ShapeDtypeStruct((rows, out_cols), out_dtype),
        grid_spec=pltpu.PrefetchScalarGridSpec(
            num_scalar_prefetch=0,
            grid=(grid_m,),
            in_specs=[
                pl.BlockSpec((tm, state_size), lambda i: (i, 0)),  # x tile (f32)
                resident(w1), resident(b1),
                resident(w2), resident(b2),
                resident(w3), resident(b3),
            ],
            out_specs=pl.BlockSpec((tm, out_cols), lambda i: (i, 0)),
        ),
        compiler_params=pltpu.CompilerParams(
            dimension_semantics=("parallel",),   # megacore sharding on v7x
            vmem_limit_bytes=vmem_limit),
    )(x, w1, b1, w2, b2, w3, b3)

    if rows != batch or out_cols != action_size:
        out = out[:batch, :action_size]
    return out


def init_linear(key, in_features, out_features):
    """PyTorch nn.Linear default init: U(-1/sqrt(fan_in), 1/sqrt(fan_in))."""
    kw, kb = jax.random.split(key)
    bound = 1.0 / jnp.sqrt(jnp.float32(in_features))
    # stored as (in, out), i.e. W.T relative to PyTorch's (out, in)
    w = jax.random.uniform(kw, (in_features, out_features), jnp.float32, -bound, bound)
    b = jax.random.uniform(kb, (1, out_features), jnp.float32, -bound, bound)
    return w, b


if __name__ == "__main__":
    state_size = 8
    action_size = 4
    hidden = 128  # fixed by the module definition

    key = jax.random.PRNGKey(0)
    k_xs, k_xl, k1, k2, k3 = jax.random.split(key, 5)

    params = (
        init_linear(k1, state_size, hidden),
        init_linear(k2, hidden, hidden),
        init_linear(k3, hidden, action_size),
    )

    def ref_fwd(x):
        (w1, b1), (w2, b2), (w3, b3) = params
        h = jnp.maximum(x @ w1 + b1, 0.0)
        h = jnp.maximum(h @ w2 + b2, 0.0)
        return h @ w3 + b3

    # One-time kernel-ready layouts (hoisted weight prep).
    prepped = prepare_params(params)                                   # f32, lane-dense out
    prepped_narrow = prepare_params(params, lane_dense_out=False)      # f32, narrow out
    prepped_bf16 = prepare_params(params, param_dtype=jnp.bfloat16)    # bf16 weights

    # 1) Tiny batch (single-transition style usage): 1 grid step, ragged block.
    x_small = jax.random.normal(k_xs, (2, state_size), jnp.float32)
    out_small = jax.block_until_ready(
        dqn_forward(x_small, prepped, action_size=action_size))
    assert out_small.shape == (2, action_size)
    assert jnp.allclose(out_small, ref_fwd(x_small), atol=1e-5, rtol=1e-5)

    # 2) Replay-buffer batch that is not a tile multiple: 2 grid steps (megacore
    #    split on v7x) with resident weights + ragged final block; narrow
    #    (action_size-wide) output writeback layout.
    x_big = jax.random.normal(k_xl, (600, state_size), jnp.float32)
    out_big = jax.block_until_ready(
        dqn_forward(x_big, prepped_narrow, action_size=action_size))
    assert out_big.shape == (600, action_size)
    assert jnp.allclose(out_big, ref_fwd(x_big), atol=1e-4, rtol=1e-4)

    # 3) bf16 weights (cast hoisted) + bf16 output writeback (half the HBM
    #    write bytes); accumulation stays f32 so Q-values remain close.
    out_bf16 = jax.block_until_ready(
        dqn_forward(x_big, prepped_bf16, action_size=action_size,
                    out_dtype=jnp.bfloat16))
    assert out_bf16.shape == (600, action_size)
    assert jnp.allclose(out_bf16.astype(jnp.float32), ref_fwd(x_big),
                        atol=0.15, rtol=0.05)

    print("KERNEL_OK")
</pallas_src>

<mosaic_0001>
module attributes {stable_mosaic.version = 11 : i64} {
  func.func @dqn_kernel(%arg0: i32, %arg1: memref<8x8xf32, #tpu.memory_space<vmem>>, %arg2: memref<8x128xf32, #tpu.memory_space<vmem>>, %arg3: memref<1x128xf32, #tpu.memory_space<vmem>>, %arg4: memref<128x128xf32, #tpu.memory_space<vmem>>, %arg5: memref<1x128xf32, #tpu.memory_space<vmem>>, %arg6: memref<128x128xf32, #tpu.memory_space<vmem>>, %arg7: memref<1x128xf32, #tpu.memory_space<vmem>>, %arg8: memref<8x128xf32, #tpu.memory_space<vmem>>) attributes {dimension_semantics = [#tpu.dimension_semantics<parallel>], iteration_bounds = array<i64: 1>, scalar_prefetch = 0 : i64, scratch_operands = 0 : i64, tpu.core_type = #tpu.core_type<tc>, window_params = [{transform_indices = @transform_0, window_bounds = array<i64: 8, 8>}, {pipeline_mode = #tpu.pipeline_mode<synchronous>, transform_indices = @transform_1, window_bounds = array<i64: 8, 128>}, {pipeline_mode = #tpu.pipeline_mode<synchronous>, transform_indices = @transform_2, window_bounds = array<i64: 1, 128>}, {pipeline_mode = #tpu.pipeline_mode<synchronous>, transform_indices = @transform_3, window_bounds = array<i64: 128, 128>}, {pipeline_mode = #tpu.pipeline_mode<synchronous>, transform_indices = @transform_4, window_bounds = array<i64: 1, 128>}, {pipeline_mode = #tpu.pipeline_mode<synchronous>, transform_indices = @transform_5, window_bounds = array<i64: 128, 128>}, {pipeline_mode = #tpu.pipeline_mode<synchronous>, transform_indices = @transform_6, window_bounds = array<i64: 1, 128>}, {transform_indices = @transform_7, window_bounds = array<i64: 8, 128>}]} {
    %c0 = arith.constant 0 : index
    %c0_0 = arith.constant 0 : index
    %0 = vector.load %arg1[%c0, %c0_0] : memref<8x8xf32, #tpu.memory_space<vmem>>, vector<8x8xf32>
    %c0_1 = arith.constant 0 : index
    %c0_2 = arith.constant 0 : index
    %1 = vector.load %arg2[%c0_1, %c0_2] : memref<8x128xf32, #tpu.memory_space<vmem>>, vector<8x128xf32>
    %cst = arith.constant dense<0.000000e+00> : vector<8x128xf32>
    %2 = tpu.matmul %0, %1, %cst {dimension_numbers = #tpu.dot_dimension_numbers<[1], [0], [0], [1], [0, 0, 1, 1], [], []>} : vector<8x8xf32>, vector<8x128xf32>, vector<8x128xf32> -> vector<8x128xf32>
    %c0_3 = arith.constant 0 : index
    %c0_4 = arith.constant 0 : index
    %3 = vector.load %arg3[%c0_3, %c0_4] : memref<1x128xf32, #tpu.memory_space<vmem>>, vector<1x128xf32>
    %4 = vector.broadcast %3 : vector<1x128xf32> to vector<8x128xf32>
    %5 = arith.addf %2, %4 : vector<8x128xf32>
    %cst_5 = arith.constant 0.000000e+00 : f32
    %6 = vector.broadcast %cst_5 : f32 to vector<8x128xf32>
    %7 = arith.maximumf %5, %6 : vector<8x128xf32>
    %c0_6 = arith.constant 0 : index
    %c0_7 = arith.constant 0 : index
    %8 = vector.load %arg4[%c0_6, %c0_7] : memref<128x128xf32, #tpu.memory_space<vmem>>, vector<128x128xf32>
    %cst_8 = arith.constant dense<0.000000e+00> : vector<8x128xf32>
    %9 = tpu.matmul %7, %8, %cst_8 {dimension_numbers = #tpu.dot_dimension_numbers<[1], [0], [0], [1], [0, 0, 1, 1], [], []>} : vector<8x128xf32>, vector<128x128xf32>, vector<8x128xf32> -> vector<8x128xf32>
    %c0_9 = arith.constant 0 : index
    %c0_10 = arith.constant 0 : index
    %10 = vector.load %arg5[%c0_9, %c0_10] : memref<1x128xf32, #tpu.memory_space<vmem>>, vector<1x128xf32>
    %11 = vector.broadcast %10 : vector<1x128xf32> to vector<8x128xf32>
    %12 = arith.addf %9, %11 : vector<8x128xf32>
    %cst_11 = arith.constant 0.000000e+00 : f32
    %13 = vector.broadcast %cst_11 : f32 to vector<8x128xf32>
    %14 = arith.maximumf %12, %13 : vector<8x128xf32>
    %c0_12 = arith.constant 0 : index
    %c0_13 = arith.constant 0 : index
    %15 = vector.load %arg6[%c0_12, %c0_13] : memref<128x128xf32, #tpu.memory_space<vmem>>, vector<128x128xf32>
    %cst_14 = arith.constant dense<0.000000e+00> : vector<8x128xf32>
    %16 = tpu.matmul %14, %15, %cst_14 {dimension_numbers = #tpu.dot_dimension_numbers<[1], [0], [0], [1], [0, 0, 1, 1], [], []>} : vector<8x128xf32>, vector<128x128xf32>, vector<8x128xf32> -> vector<8x128xf32>
    %c0_15 = arith.constant 0 : index
    %c0_16 = arith.constant 0 : index
    %17 = vector.load %arg7[%c0_15, %c0_16] : memref<1x128xf32, #tpu.memory_space<vmem>>, vector<1x128xf32>
    %18 = vector.broadcast %17 : vector<1x128xf32> to vector<8x128xf32>
    %19 = arith.addf %16, %18 : vector<8x128xf32>
    %c0_17 = arith.constant 0 : index
    %c0_18 = arith.constant 0 : index
    %20 = vector.load %arg8[%c0_17, %c0_18] : memref<8x128xf32, #tpu.memory_space<vmem>>, vector<8x128xf32>
    tpu.vector_store %arg8[%c0_17, %c0_18], %19 {strides = array<i32>} : memref<8x128xf32, #tpu.memory_space<vmem>>, vector<8x128xf32>,
    return
  }
  func.func @transform_0(%arg0: i32) -> (i32, i32) {
    %c0_i32 = arith.constant 0 : i32
    %c0_i32_0 = arith.constant 0 : i32
    return %arg0, %c0_i32 : i32, i32
  }
  func.func @transform_1(%arg0: i32) -> (i32, i32) {
    %c0_i32 = arith.constant 0 : i32
    %c0_i32_0 = arith.constant 0 : i32
    %c0_i32_1 = arith.constant 0 : i32
    return %c0_i32, %c0_i32_0 : i32, i32
  }
  func.func @transform_2(%arg0: i32) -> (i32, i32) {
    %c0_i32 = arith.constant 0 : i32
    %c0_i32_0 = arith.constant 0 : i32
    %c0_i32_1 = arith.constant 0 : i32
    return %c0_i32, %c0_i32_0 : i32, i32
  }
  func.func @transform_3(%arg0: i32) -> (i32, i32) {
    %c0_i32 = arith.constant 0 : i32
    %c0_i32_0 = arith.constant 0 : i32
    %c0_i32_1 = arith.constant 0 : i32
    return %c0_i32, %c0_i32_0 : i32, i32
  }
  func.func @transform_4(%arg0: i32) -> (i32, i32) {
    %c0_i32 = arith.constant 0 : i32
    %c0_i32_0 = arith.constant 0 : i32
    %c0_i32_1 = arith.constant 0 : i32
    return %c0_i32, %c0_i32_0 : i32, i32
  }
  func.func @transform_5(%arg0: i32) -> (i32, i32) {
    %c0_i32 = arith.constant 0 : i32
    %c0_i32_0 = arith.constant 0 : i32
    %c0_i32_1 = arith.constant 0 : i32
    return %c0_i32, %c0_i32_0 : i32, i32
  }
  func.func @transform_6(%arg0: i32) -> (i32, i32) {
    %c0_i32 = arith.constant 0 : i32
    %c0_i32_0 = arith.constant 0 : i32
    %c0_i32_1 = arith.constant 0 : i32
    return %c0_i32, %c0_i32_0 : i32, i32
  }
  func.func @transform_7(%arg0: i32) -> (i32, i32) {
    %c0_i32 = arith.constant 0 : i32
    %c0_i32_0 = arith.constant 0 : i32
    return %arg0, %c0_i32 : i32, i32
  }
}

</mosaic_0001>

<bundles_post_ra>
// kernel: dqn_forward.1
= control target key start
LH: loop header
LB: loop body
LE: loop exit
PB: predicated region body
PF: predicated region fallthrough
CT: control target
= control target key end

     0   :  { %12 = vsyncpa [#allocation3], 0  ;;  %s305_s0 = inlined_call_operand.vmem [shape: f32[8,8], index: 0, kind: input, shape index: {}]   ;;  %s306_s1 = inlined_call_operand.vmem [shape: f32[8,128], index: 1, kind: input, shape index: {}]   ;;  %s307_s2 = inlined_call_operand.vmem [shape: f32[1,128], index: 2, kind: input, shape index: {}]   ;;  %s308_s3 = inlined_call_operand.hbm [shape: f32[128,128], index: 3, kind: input, shape index: {}]   ;;  %s309_s4 = inlined_call_operand.vmem [shape: f32[1,128], index: 4, kind: input, shape index: {}]   ;;  %s310_s5 = inlined_call_operand.hbm [shape: f32[128,128], index: 5, kind: input, shape index: {}]   ;;  %s311_s6 = inlined_call_operand.vmem [shape: f32[1,128], index: 6, kind: input, shape index: {}]   ;;  %s312_s7 = inlined_call_operand.vmem [shape: f32[8,128], index: 7, kind: output, shape index: {}]  }
   0x1   :  { %s24_s26 = sshll.u32 %s308_s3, 4  ;;  %s25_s26 = int_to_ptr.hbm [resolvable:$true] %s24_s26 }
   0x2   :  { %13 = vsyncpa [#allocation5], 0  ;;  %s237_s27 = smov [#allocation2]   ;;  %s39_s8 = sshll.u32 %s310_s5, 4  ;;  %s40_s8 = int_to_ptr.hbm [resolvable:$true] %s39_s8 }
   0x3   :  { %s26_s28 = sshll.u32 %s237_s27, 4  ;;  %s238_s9 = smov 128   ;;  %s27_s28 = int_to_ptr.vmem [resolvable:$true] %s26_s28 }
   0x4   :  { %s239_s10 = smov 8   ;;  %s240_s11 = smov [#allocation4]  }
   0x5   :  { %32 = dma.hbm_to_vmem [thread:$0]  %s25_s26, 2048, %s27_s28, [#allocation3], %s238_s9, %s238_s9, %s239_s10  }
   0x6   :  { %s41_s12 = sshll.u32 %s240_s11, 4  ;;  %s42_s12 = int_to_ptr.vmem [resolvable:$true] %s41_s12 }
   0x7   :  { %47 = dma.hbm_to_vmem [thread:$0]  %s40_s8, 2048, %s42_s12, [#allocation5], %s238_s9, %s238_s9, %s239_s10  }
   0x8   :  { %233 = dma.done.wait [#allocation3], 2048  }
   0x9   :  { %234 = vsyncadd [#allocation3], 4294965248 }
   0xa   :  { %235 = dma.done.wait [#allocation5], 2048  }
   0xb   :  { %236 = vsyncadd [#allocation5], 4294965248  ;;  %vm64_vm0 = vcmask 64512   ;;  %v59_v0 = vld [vmem:[%s306_s1] sm:$0xff]  ;;  %v104_v2 = vld [vmem:[#allocation2 + $0x78] sm:$0xff] }
   0xc   :  { %v58_v1 = vld [vmem:[%s305_s0] sm:$0xff]  ;;  %83 = vmatpush.msra.mxu0 %v59_v0  ;;  %109 = vmatpush.msra.mxu1 %v104_v2  ;;  %v103_v3 = vld [vmem:[#allocation2 + $0x70] sm:$0xff]  ;;  %v102_v4 = vld [vmem:[#allocation2 + $0x68] sm:$0xff] }
   0xd   :  { %177 = vmatmul.msk.f32.vlgmr.msra.gmra.mxu0 %vm64_vm0, %v58_v1  ;;  %v101_v5 = vld [vmem:[#allocation2 + $0x60] sm:$0xff]  ;;  %v100_v6 = vld [vmem:[#allocation2 + $0x58] sm:$0xff]  ;;  %v99_v7 = vld [vmem:[#allocation2 + $0x50] sm:$0xff] }
   0xe   :  { %110 = vmatpush.msra.mxu1 %v103_v3  ;;  %v98_v8 = vld [vmem:[#allocation2 + $0x48] sm:$0xff]  ;;  %v97_v9 = vld [vmem:[#allocation2 + $0x40] sm:$0xff]  ;;  %v96_v10 = vld [vmem:[#allocation2 + $0x38] sm:$0xff] }
   0xf   :  { %v95_v11 = vld [vmem:[#allocation2 + $0x30] sm:$0xff]  ;;  %v94_v12 = vld [vmem:[#allocation2 + $0x28] sm:$0xff]  ;;  %v93_v13 = vld [vmem:[#allocation2 + $0x20] sm:$0xff] }
  0x10   :  { %111 = vmatpush.msra.mxu1 %v102_v4  ;;  %v92_v14 = vld [vmem:[#allocation2 + $0x18] sm:$0xff]  ;;  %v91_v15 = vld [vmem:[#allocation2 + $0x10] sm:$0xff]  ;;  %v90_v16 = vld [vmem:[#allocation2 + $0x8] sm:$0xff] }
  0x11   :  { %v89_v17 = vld [vmem:[#allocation2] sm:$0xff]  ;;  %v145_v18 = vld [vmem:[#allocation4 + $0x78] sm:$0xff]  ;;  %v144_v19 = vld [vmem:[#allocation4 + $0x70] sm:$0xff] }
  0x12   :  { %112 = vmatpush.msra.mxu1 %v101_v5  ;;  %150 = vmatpush.msra.mxu2 %v145_v18  ;;  %v143_v20 = vld [vmem:[#allocation4 + $0x68] sm:$0xff]  ;;  %v142_v21 = vld [vmem:[#allocation4 + $0x60] sm:$0xff]  ;;  %v141_v22 = vld [vmem:[#allocation4 + $0x58] sm:$0xff] }
  0x13   :  { %v140_v23 = vld [vmem:[#allocation4 + $0x50] sm:$0xff]  ;;  %v139_v24 = vld [vmem:[#allocation4 + $0x48] sm:$0xff]  ;;  %v138_v25 = vld [vmem:[#allocation4 + $0x40] sm:$0xff] }
  0x14   :  { %113 = vmatpush.msra.mxu1 %v100_v6  ;;  %151 = vmatpush.msra.mxu2 %v144_v19  ;;  %v137_v26 = vld [vmem:[#allocation4 + $0x38] sm:$0xff]  ;;  %v136_v27 = vld [vmem:[#allocation4 + $0x30] sm:$0xff]  ;;  %v135_v28 = vld [vmem:[#allocation4 + $0x28] sm:$0xff] }
  0x15   :  { %v134_v29 = vld [vmem:[#allocation4 + $0x20] sm:$0xff]  ;;  %v133_v30 = vld [vmem:[#allocation4 + $0x18] sm:$0xff]  ;;  %v132_v35 = vld [vmem:[#allocation4 + $0x10] sm:$0xff] }
  0x16   :  { %114 = vmatpush.msra.mxu1 %v99_v7  ;;  %152 = vmatpush.msra.mxu2 %v143_v20  ;;  %v182_v31 = vld [vmem:[%s307_s2] ss:$0 sm:$0xff]  ;;  %v131_v36 = vld [vmem:[#allocation4 + $0x8] sm:$0xff] }
  0x17   :  { %v130_v37 = vld [vmem:[#allocation4] sm:$0xff] }
  0x18   :  { %115 = vmatpush.msra.mxu1 %v98_v8  ;;  %153 = vmatpush.msra.mxu2 %v142_v21  ;;  %v183_v38 = vld [vmem:[%s309_s4] ss:$0 sm:$0xff] }
  0x19   :  { %v184_v42 = vld [vmem:[%s311_s6] ss:$0 sm:$0xff] }
  0x1a   :  { %116 = vmatpush.msra.mxu1 %v97_v9  ;;  %154 = vmatpush.msra.mxu2 %v141_v22 }
  0x1c   :  { %117 = vmatpush.msra.mxu1 %v96_v10  ;;  %155 = vmatpush.msra.mxu2 %v140_v23 }
  0x1e   :  { %118 = vmatpush.msra.mxu1 %v95_v11  ;;  %156 = vmatpush.msra.mxu2 %v139_v24 }
  0x20   :  { %119 = vmatpush.msra.mxu1 %v94_v12  ;;  %157 = vmatpush.msra.mxu2 %v138_v25 }
  0x22   :  { %120 = vmatpush.msra.mxu1 %v93_v13  ;;  %158 = vmatpush.msra.mxu2 %v137_v26 }
  0x24   :  { %121 = vmatpush.msra.mxu1 %v92_v14  ;;  %159 = vmatpush.msra.mxu2 %v136_v27 }
  0x26   :  { %122 = vmatpush.msra.mxu1 %v91_v15  ;;  %160 = vmatpush.msra.mxu2 %v135_v28 }
  0x28   :  { %123 = vmatpush.msra.mxu1 %v90_v16  ;;  %161 = vmatpush.msra.mxu2 %v134_v29 }
  0x2a   :  { %124 = vmatpush.msra.mxu1 %v89_v17  ;;  %162 = vmatpush.msra.mxu2 %v133_v30 }
  0x2c   :  { %163 = vmatpush.msra.mxu2 %v132_v35 }
  0x2e   :  { %164 = vmatpush.msra.mxu2 %v131_v36 }
  0x30   :  { %165 = vmatpush.msra.mxu2 %v130_v37 }
  0x8a   :  { %v85_v32 = vpop.f32.mrf.mxu0 }
  0x8b   :  { %v86_v33 = vadd.f32 %v182_v31, %v85_v32 }
  0x8d   :  { %v88_v34 = vmax.f32 %v86_v33, 0.0 }
  0x8f   :  { %125 = vmatmul.f32.vlgmr.msra.gmra.mxu1 %v88_v34 }
 0x10c   :  { %v126_v39 = vpop.f32.mrf.mxu1 }
 0x10d   :  { %v127_v40 = vadd.f32 %v183_v38, %v126_v39 }
 0x10f   :  { %v129_v41 = vmax.f32 %v127_v40, 0.0 }
 0x111   :  { %166 = vmatmul.f32.vlgmr.msra.gmra.mxu2 %v129_v41 }
 0x194   :  { %v167_v43 = vpop.f32.mrf.mxu2 }
 0x195   :  { %v168_v44 = vadd.f32 %v184_v42, %v167_v43 }
 0x197   :  { %170 = vst [vmem:[%s312_s7] sm:$0xff] %v168_v44 }
 0x198   :  { %175 = vsyncpa [#allocation3], 1 }
 0x199   :  { %176 = vsyncpa [#allocation5], 1 }

</bundles_post_ra>
